<compile_context>
chip_gen: v5e
topology: v5e:2x2
jax: 0.10.0
libtpu: 0.0.40
codegen_flags: <defaults>
</compile_context>

<pallas_src>
import functools

import jax
import jax.numpy as jnp
from jax.experimental import pallas as pl
from jax.experimental.pallas import tpu as pltpu


def _round_up(x: int, m: int) -> int:
    return ((x + m - 1) // m) * m


def _mlp_fused_kernel(*refs, num_layers: int, out_widths: tuple):
    """refs = (x_ref, w_0, ..., w_{L-1}, b_stack_ref, o_ref).

    x_ref:      (TILE_N, F0)            -- unpadded feature lanes
    w_l:        (K_l, out_widths[l])    -- bf16, 128-aligned output dim
    b_stack:    (num_layers, F_max_pad) -- f32, one row per layer
    o_ref:      (TILE_N, out_widths[-1])
    The whole layer chain runs on one batch tile; intermediates live only in
    vregs/VMEM.
    """
    x_ref = refs[0]
    w_refs = refs[1:1 + num_layers]
    b_ref = refs[1 + num_layers]
    o_ref = refs[-1]

    h = x_ref[...]                                    # f32 activations
    for l in range(num_layers):
        w = w_refs[l][...]                            # bf16 weights
        b = b_ref[l:l + 1, :out_widths[l]]            # (1, F_out_pad) f32
        # bf16 feeds, f32 MXU accumulation.
        h = jnp.dot(h.astype(w.dtype), w,
                    preferred_element_type=jnp.float32) + b
        if l < num_layers - 1:
            h = jnp.maximum(h, 0.0)                   # ReLU on hidden layers only
    o_ref[...] = h.astype(o_ref.dtype)


def init_mlp_params(key, in_channels, hidden_channels, out_channels, num_layers):
    """Deterministic init mimicking torch.nn.Linear's uniform(-1/sqrt(fan_in),..).

    Weights stored as (in_features, out_features) = transpose of PyTorch's
    layout, so the kernel hot path is x @ W + b.
    """
    params = []
    for i in range(num_layers):
        first = in_channels if i == 0 else hidden_channels
        second = out_channels if i == num_layers - 1 else hidden_channels
        key, kw, kb = jax.random.split(key, 3)
        bound = 1.0 / jnp.sqrt(jnp.float32(first))
        w = jax.random.uniform(kw, (first, second), jnp.float32, -bound, bound)
        b = jax.random.uniform(kb, (second,), jnp.float32, -bound, bound)
        params.append((w, b))
    return params


def prep_mlp_params(params, weight_dtype=jnp.bfloat16):
    """One-time prep: zero-pad output dims to 128, cast weights to bf16,
    stack biases into a single (num_layers, F_max_pad) f32 array.

    The first layer's K dim is left unpadded so it matches the unpadded x
    lanes; deeper layers' K dims are padded to match the previous layer's
    padded output (those padded rows are zero -> exact)."""
    num_layers = len(params)
    weights = []
    out_widths = []
    for i, (w, _) in enumerate(params):
        f_in, f_out = w.shape
        f_in_p = f_in if i == 0 else _round_up(f_in, 128)
        f_out_p = _round_up(f_out, 128)
        w_p = jnp.zeros((f_in_p, f_out_p), weight_dtype)
        w_p = w_p.at[:f_in, :f_out].set(w.astype(weight_dtype))
        weights.append(w_p)
        out_widths.append(f_out_p)
    f_max = max(out_widths)
    b_stack = jnp.zeros((num_layers, f_max), jnp.float32)
    for i, (_, b) in enumerate(params):
        b_stack = b_stack.at[i, :b.shape[0]].set(b.astype(jnp.float32))
    return weights, b_stack, tuple(out_widths)


def mlp_predictor_forward(prepped, x, out_channels, *,
                          dropout_p=0.0, training=False, tile_n=256):
    """Matches MLPPredictor.forward: Linear -> ReLU -> Dropout for all but the
    last layer, then a final Linear (single fused kernel, inference mode).

    tile_n default 256 is a safe middle ground; raise to 512-1024 on v6e
    (128 MiB VMEM), keep 128-256 on v5e, 256-512 on v7x (64 MiB VMEM)."""
    del dropout_p, training  # inference: F.dropout(training=False) is identity

    weights, b_stack, out_widths = prepped
    num_layers = len(weights)
    n, f_in = x.shape
    assert f_in == weights[0].shape[0], "x feature dim must match first layer"
    f_out_p = out_widths[-1]

    # Batch tiling: tile rows (>= 8 sublanes); only row-pad when ragged.
    tile = min(tile_n, _round_up(max(n, 1), 8))
    n_p = _round_up(n, tile)
    x_in = x if n_p == n else jnp.zeros((n_p, f_in), x.dtype).at[:n].set(x)

    in_specs = [pl.BlockSpec((tile, f_in), lambda i: (i, 0))]
    for w in weights:
        # Full-extent block, constant index_map, single-buffered: the weight
        # is DMA'd once and stays VMEM-resident for the whole grid.
        in_specs.append(pl.BlockSpec(w.shape, lambda i: (0, 0),
                                     pipeline_mode=pl.Buffered(1)))
    in_specs.append(pl.BlockSpec(b_stack.shape, lambda i: (0, 0),
                                 pipeline_mode=pl.Buffered(1)))

    # VMEM budget: double-buffered x tile + single-buffered weights/biases
    # + double-buffered output tile, 2x headroom, capped at 64 MiB (legal on
    # every TPU generation).
    bytes_x = 2 * tile * f_in * x.dtype.itemsize
    bytes_w = sum(int(w.size) * w.dtype.itemsize for w in weights)
    bytes_b = int(b_stack.size) * b_stack.dtype.itemsize
    bytes_o = 2 * tile * f_out_p * 4
    assert bytes_w + bytes_b <= 48 * 1024 * 1024, (
        "weights too large for whole-weight VMEM residency; needs per-layer "
        "K/N tiling (see TODO at top of file)")
    vmem_limit = int(min(64 * 1024 * 1024,
                         max(2 * (bytes_x + bytes_w + bytes_b + bytes_o),
                             32 * 1024 * 1024)))

    kernel = functools.partial(_mlp_fused_kernel,
                               num_layers=num_layers, out_widths=out_widths)
    out_p = pl.pallas_call(
        kernel,
        out_shape=jax.ShapeDtypeStruct((n_p, f_out_p), jnp.float32),
        grid_spec=pl.GridSpec(
            grid=(n_p // tile,),
            in_specs=in_specs,
            # Exactly 128-lane-wide output slab -> lane-dense unmasked stores.
            out_specs=pl.BlockSpec((tile, f_out_p), lambda i: (i, 0)),
        ),
        compiler_params=pltpu.CompilerParams(
            # Batch tiles are independent: shard across TCs on v7x megacore.
            dimension_semantics=("parallel",),
            vmem_limit_bytes=vmem_limit,
        ),
    )(x_in, *weights, b_stack)

    # Slice the real rows / output columns back out of the padded slab.
    return out_p[:n, :out_channels]


if __name__ == "__main__":
    key = jax.random.PRNGKey(0)
    key, kx = jax.random.split(key)

    batch = 8
    in_channels = 16
    hidden_channels = 32
    out_channels = 1
    num_layers = 3
    dropout = 0.5  # inactive at inference

    x = jax.random.normal(kx, (batch, in_channels), jnp.float32)
    params = init_mlp_params(key, in_channels, hidden_channels, out_channels,
                             num_layers)
    prepped = prep_mlp_params(params)   # pad/cast/stack once, outside hot path

    out = mlp_predictor_forward(prepped, x, out_channels,
                                dropout_p=dropout, training=False)
    out = jax.block_until_ready(out)

    # Pure-JAX f32 reference.  The kernel feeds the MXU bf16 (f32 accumulate),
    # so the tolerance is loosened from the previous 1e-5.
    ref = x
    for (w, b) in params[:-1]:
        ref = jnp.maximum(ref @ w + b, 0.0)
    w, b = params[-1]
    ref = ref @ w + b
    assert out.shape == (batch, out_channels)
    assert jnp.allclose(out, ref, atol=5e-2, rtol=5e-2), (out, ref)

    print("KERNEL_OK")
</pallas_src>

<mosaic_0001>
module attributes {stable_mosaic.version = 11 : i64} {
  func.func @_mlp_fused_kernel(%arg0: i32, %arg1: memref<8x16xf32, #tpu.memory_space<vmem>>, %arg2: memref<16x128xbf16, #tpu.memory_space<vmem>>, %arg3: memref<128x128xbf16, #tpu.memory_space<vmem>>, %arg4: memref<128x128xbf16, #tpu.memory_space<vmem>>, %arg5: memref<3x128xf32, #tpu.memory_space<vmem>>, %arg6: memref<8x128xf32, #tpu.memory_space<vmem>>) attributes {dimension_semantics = [#tpu.dimension_semantics<parallel>], iteration_bounds = array<i64: 1>, scalar_prefetch = 0 : i64, scratch_operands = 0 : i64, tpu.core_type = #tpu.core_type<tc>, window_params = [{transform_indices = @transform_0, window_bounds = array<i64: 8, 16>}, {pipeline_mode = #tpu.pipeline_mode<synchronous>, transform_indices = @transform_1, window_bounds = array<i64: 16, 128>}, {pipeline_mode = #tpu.pipeline_mode<synchronous>, transform_indices = @transform_2, window_bounds = array<i64: 128, 128>}, {pipeline_mode = #tpu.pipeline_mode<synchronous>, transform_indices = @transform_3, window_bounds = array<i64: 128, 128>}, {pipeline_mode = #tpu.pipeline_mode<synchronous>, transform_indices = @transform_4, window_bounds = array<i64: 3, 128>}, {transform_indices = @transform_5, window_bounds = array<i64: 8, 128>}]} {
    %c0 = arith.constant 0 : index
    %c0_0 = arith.constant 0 : index
    %0 = vector.load %arg1[%c0, %c0_0] : memref<8x16xf32, #tpu.memory_space<vmem>>, vector<8x16xf32>
    %c0_1 = arith.constant 0 : index
    %c0_2 = arith.constant 0 : index
    %1 = vector.load %arg2[%c0_1, %c0_2] : memref<16x128xbf16, #tpu.memory_space<vmem>>, vector<16x128xbf16>
    %c0_3 = arith.constant 0 : index
    %c0_4 = arith.constant 0 : index
    %2 = vector.load %arg5[%c0_3, %c0_4] : memref<3x128xf32, #tpu.memory_space<vmem>>, vector<1x128xf32>
    %3 = arith.truncf %0 : vector<8x16xf32> to vector<8x16xbf16>
    %cst = arith.constant dense<0.000000e+00> : vector<8x128xf32>
    %4 = tpu.matmul %3, %1, %cst {dimension_numbers = #tpu.dot_dimension_numbers<[1], [0], [0], [1], [0, 0, 1, 1], [], []>} : vector<8x16xbf16>, vector<16x128xbf16>, vector<8x128xf32> -> vector<8x128xf32>
    %5 = vector.broadcast %2 : vector<1x128xf32> to vector<8x128xf32>
    %6 = arith.addf %4, %5 : vector<8x128xf32>
    %cst_5 = arith.constant 0.000000e+00 : f32
    %7 = vector.broadcast %cst_5 : f32 to vector<8x128xf32>
    %8 = arith.maximumf %6, %7 : vector<8x128xf32>
    %c0_6 = arith.constant 0 : index
    %c0_7 = arith.constant 0 : index
    %9 = vector.load %arg3[%c0_6, %c0_7] : memref<128x128xbf16, #tpu.memory_space<vmem>>, vector<128x128xbf16>
    %c1 = arith.constant 1 : index
    %c0_8 = arith.constant 0 : index
    %10 = vector.load %arg5[%c1, %c0_8] : memref<3x128xf32, #tpu.memory_space<vmem>>, vector<1x128xf32>
    %11 = arith.truncf %8 : vector<8x128xf32> to vector<8x128xbf16>
    %cst_9 = arith.constant dense<0.000000e+00> : vector<8x128xf32>
    %12 = tpu.matmul %11, %9, %cst_9 {dimension_numbers = #tpu.dot_dimension_numbers<[1], [0], [0], [1], [0, 0, 1, 1], [], []>} : vector<8x128xbf16>, vector<128x128xbf16>, vector<8x128xf32> -> vector<8x128xf32>
    %13 = vector.broadcast %10 : vector<1x128xf32> to vector<8x128xf32>
    %14 = arith.addf %12, %13 : vector<8x128xf32>
    %cst_10 = arith.constant 0.000000e+00 : f32
    %15 = vector.broadcast %cst_10 : f32 to vector<8x128xf32>
    %16 = arith.maximumf %14, %15 : vector<8x128xf32>
    %c0_11 = arith.constant 0 : index
    %c0_12 = arith.constant 0 : index
    %17 = vector.load %arg4[%c0_11, %c0_12] : memref<128x128xbf16, #tpu.memory_space<vmem>>, vector<128x128xbf16>
    %c2 = arith.constant 2 : index
    %c0_13 = arith.constant 0 : index
    %18 = vector.load %arg5[%c2, %c0_13] : memref<3x128xf32, #tpu.memory_space<vmem>>, vector<1x128xf32>
    %19 = arith.truncf %16 : vector<8x128xf32> to vector<8x128xbf16>
    %cst_14 = arith.constant dense<0.000000e+00> : vector<8x128xf32>
    %20 = tpu.matmul %19, %17, %cst_14 {dimension_numbers = #tpu.dot_dimension_numbers<[1], [0], [0], [1], [0, 0, 1, 1], [], []>} : vector<8x128xbf16>, vector<128x128xbf16>, vector<8x128xf32> -> vector<8x128xf32>
    %21 = vector.broadcast %18 : vector<1x128xf32> to vector<8x128xf32>
    %22 = arith.addf %20, %21 : vector<8x128xf32>
    %c0_15 = arith.constant 0 : index
    %c0_16 = arith.constant 0 : index
    %23 = vector.load %arg6[%c0_15, %c0_16] : memref<8x128xf32, #tpu.memory_space<vmem>>, vector<8x128xf32>
    tpu.vector_store %arg6[%c0_15, %c0_16], %22 {strides = array<i32>} : memref<8x128xf32, #tpu.memory_space<vmem>>, vector<8x128xf32>,
    return
  }
  func.func @transform_0(%arg0: i32) -> (i32, i32) {
    %c0_i32 = arith.constant 0 : i32
    %c0_i32_0 = arith.constant 0 : i32
    return %arg0, %c0_i32 : i32, i32
  }
  func.func @transform_1(%arg0: i32) -> (i32, i32) {
    %c0_i32 = arith.constant 0 : i32
    %c0_i32_0 = arith.constant 0 : i32
    %c0_i32_1 = arith.constant 0 : i32
    return %c0_i32, %c0_i32_0 : i32, i32
  }
  func.func @transform_2(%arg0: i32) -> (i32, i32) {
    %c0_i32 = arith.constant 0 : i32
    %c0_i32_0 = arith.constant 0 : i32
    %c0_i32_1 = arith.constant 0 : i32
    return %c0_i32, %c0_i32_0 : i32, i32
  }
  func.func @transform_3(%arg0: i32) -> (i32, i32) {
    %c0_i32 = arith.constant 0 : i32
    %c0_i32_0 = arith.constant 0 : i32
    %c0_i32_1 = arith.constant 0 : i32
    return %c0_i32, %c0_i32_0 : i32, i32
  }
  func.func @transform_4(%arg0: i32) -> (i32, i32) {
    %c0_i32 = arith.constant 0 : i32
    %c0_i32_0 = arith.constant 0 : i32
    %c0_i32_1 = arith.constant 0 : i32
    return %c0_i32, %c0_i32_0 : i32, i32
  }
  func.func @transform_5(%arg0: i32) -> (i32, i32) {
    %c0_i32 = arith.constant 0 : i32
    %c0_i32_0 = arith.constant 0 : i32
    return %arg0, %c0_i32 : i32, i32
  }
}

</mosaic_0001>

<bundles_post_ra>
// kernel: tpu_custom_call.1
= control target key start
LH: loop header
LB: loop body
LE: loop exit
PB: predicated region body
PF: predicated region fallthrough
CT: control target
= control target key end

     0   :  { %10 = vsyncpa [#allocation3], 0  ;;  %s612_s0 = inlined_call_operand.hbm [shape: f32[8,16], index: 0, kind: input, shape index: {}]   ;;  %s613_s1 = inlined_call_operand.hbm [shape: bf16[16,128], index: 1, kind: input, shape index: {}]   ;;  %s614_s2 = inlined_call_operand.hbm [shape: bf16[128,128], index: 2, kind: input, shape index: {}]   ;;  %s615_s3 = inlined_call_operand.hbm [shape: bf16[128,128], index: 3, kind: input, shape index: {}]   ;;  %s616_s4 = inlined_call_operand.hbm [shape: f32[3,128], index: 4, kind: input, shape index: {}]   ;;  %s617_s5 = inlined_call_operand.hbm [shape: f32[8,128], index: 5, kind: output, shape index: {}]  }
   0x1   :  { %11 = vsyncpa [#allocation6], 0 }
   0x2   :  { %12 = vsyncpa [#allocation9], 0  ;;  %s29_s20 = sshll.u32 %s613_s1, 4  ;;  %s30_s20 = int_to_ptr.hbm [resolvable:$true] %s29_s20 }
   0x3   :  { %13 = vsyncpa [#allocation4], 0  ;;  %s556_s21 = smov [#allocation5]   ;;  %s55_s25 = sshll.u32 %s615_s3, 4  ;;  %s56_s25 = int_to_ptr.hbm [resolvable:$true] %s55_s25 }
   0x4   :  { %s31_s22 = sshll.u32 %s556_s21, 4  ;;  %s557_s26 = smov 64   ;;  %s32_s22 = int_to_ptr.vmem [resolvable:$true] %s31_s22 }
   0x5   :  { %s558_s27 = smov 4   ;;  %s559_s28 = smov [#allocation8]  }
   0x6   :  { %37 = dma.hbm_to_vmem [thread:$0]  %s30_s20, 128, %s32_s22, [#allocation6], %s557_s26, %s557_s26, %s558_s27  }
   0x7   :  { %s57_s29 = sshll.u32 %s559_s28, 4  ;;  %s19_s7 = sshll.u32 %s612_s0, 4  ;;  %s58_s29 = int_to_ptr.vmem [resolvable:$true] %s57_s29  ;;  %s20_s7 = int_to_ptr.hbm [resolvable:$true] %s19_s7 }
   0x8   :  { %63 = dma.hbm_to_vmem [thread:$0]  %s56_s25, 1024, %s58_s29, [#allocation9], %s557_s26, %s557_s26, %s558_s27  }
   0x9   :  { %s42_s9 = sshll.u32 %s614_s2, 4  ;;  %s560_s10 = smov [#allocation2]   ;;  %s43_s9 = int_to_ptr.hbm [resolvable:$true] %s42_s9 }
   0xa   :  { %s21_s11 = sshll.u32 %s560_s10, 4  ;;  %s561_s3 = smov [#allocation7]   ;;  %s22_s11 = int_to_ptr.vmem [resolvable:$true] %s21_s11 }
   0xb   :  { %24 = dma.hbm_to_vmem [thread:$0]  %s20_s7, 128, %s22_s11, [#allocation3]  }
   0xc   :  { %s44_s12 = sshll.u32 %s561_s3, 4  ;;  %s69_s15 = sshll.u32 %s616_s4, 4  ;;  %s45_s12 = int_to_ptr.vmem [resolvable:$true] %s44_s12  ;;  %s70_s15 = int_to_ptr.hbm [resolvable:$true] %s69_s15 }
   0xd   :  { %50 = dma.hbm_to_vmem [thread:$0]  %s43_s9, 1024, %s45_s12, [#allocation6], %s557_s26, %s557_s26, %s558_s27  }
   0xe   :  { %s562_s0 = smov [#allocation10]  }
   0xf   :  { %s71_s16 = sshll.u32 %s562_s0, 4  ;;  %s72_s16 = int_to_ptr.vmem [resolvable:$true] %s71_s16 }
  0x10   :  { %74 = dma.hbm_to_vmem [thread:$0]  %s70_s15, 64, %s72_s16, [#allocation9]  }
  0x11   :  { %548 = dma.done.wait [#allocation3], 128  }
  0x12   :  { %549 = vsyncadd [#allocation3], 4294967168 }
  0x13   :  { %550 = dma.done.wait [#allocation6], 1152  }
  0x14   :  { %551 = vsyncadd [#allocation6], 4294966144 }
  0x15   :  { %552 = dma.done.wait [#allocation9], 1088  }
  0x16   :  { %553 = vsyncadd [#allocation9], 4294966208  ;;  %v376_v0 = vld [vmem:[#allocation5] sm:$0xff]  ;;  %v96_v1 = vld [vmem:[#allocation2] sm:$0xff]  ;;  %vm108_vm0 = vcmask 130048   ;;  %s563_s2 = smov [#allocation11]  }
  0x17   :  { %v384_v2 = vld [vmem:[#allocation7 + $0x38] sm:$0xff]  ;;  %v100_v3 = vpack.c.bf16 %v96_v1, %v96_v1  ;;  %119 = vmatpush.bf16.msra.mxu0 %v376_v0  ;;  %v383_v4 = vld [vmem:[#allocation7 + $0x30] sm:$0xff]  ;;  %v382_v5 = vld [vmem:[#allocation7 + $0x28] sm:$0xff]  ;;  %s293_s4 = sshll.u32 %s563_s2, 4  ;;  %s295_s19 = sshll.u32 %s617_s5, 4  ;;  %s294_s4 = int_to_ptr.vmem [resolvable:$true] %s293_s4  ;;  %s296_s19 = int_to_ptr.hbm [resolvable:$true] %s295_s19 }
  0x18   :  { %193 = vmatpush.bf16.msra.mxu1 %v384_v2  ;;  %v381_v6 = vld [vmem:[#allocation7 + $0x20] sm:$0xff]  ;;  %v380_v7 = vld [vmem:[#allocation7 + $0x18] sm:$0xff]  ;;  %v379_v8 = vld [vmem:[#allocation7 + $0x10] sm:$0xff] }
  0x19   :  { %v378_v9 = vld [vmem:[#allocation7 + $0x8] sm:$0xff]  ;;  %v377_v10 = vld [vmem:[#allocation7] sm:$0xff]  ;;  %v392_v11 = vld [vmem:[#allocation8 + $0x38] sm:$0xff] }
  0x1a   :  { %311 = vmatmul.msk.bf16.vlgmr.msra.gmra.mxu0 %vm108_vm0, %v100_v3  ;;  %274 = vmatpush.bf16.msra.mxu2 %v392_v11  ;;  %v391_v12 = vld [vmem:[#allocation8 + $0x30] sm:$0xff]  ;;  %v390_v13 = vld [vmem:[#allocation8 + $0x28] sm:$0xff]  ;;  %v389_v14 = vld [vmem:[#allocation8 + $0x20] sm:$0xff] }
  0x1b   :  { %v388_v15 = vld [vmem:[#allocation8 + $0x18] sm:$0xff]  ;;  %v387_v16 = vld [vmem:[#allocation8 + $0x10] sm:$0xff]  ;;  %v401_v17 = vld [vmem:[#allocation10] ss:$0 sm:$0xff] }
  0x1c   :  { %194 = vmatpush.bf16.msra.mxu1 %v383_v4  ;;  %v386_v23 = vld [vmem:[#allocation8 + $0x8] sm:$0xff]  ;;  %v385_v24 = vld [vmem:[#allocation8] sm:$0xff] }
  0x1d   :  { %v402_v25 = vld [vmem:[#allocation10 + $0x1] ss:$0 sm:$0xff]  ;;  %v403_v31 = vld [vmem:[#allocation10 + $0x2] ss:$0 sm:$0xff] }
  0x1e   :  { %275 = vmatpush.bf16.msra.mxu2 %v391_v12 }
  0x20   :  { %195 = vmatpush.bf16.msra.mxu1 %v382_v5 }
  0x22   :  { %276 = vmatpush.bf16.msra.mxu2 %v390_v13 }
  0x24   :  { %196 = vmatpush.bf16.msra.mxu1 %v381_v6 }
  0x26   :  { %277 = vmatpush.bf16.msra.mxu2 %v389_v14 }
  0x28   :  { %197 = vmatpush.bf16.msra.mxu1 %v380_v7 }
  0x2a   :  { %278 = vmatpush.bf16.msra.mxu2 %v388_v15 }
  0x2c   :  { %198 = vmatpush.bf16.msra.mxu1 %v379_v8 }
  0x2e   :  { %279 = vmatpush.bf16.msra.mxu2 %v387_v16 }
  0x30   :  { %199 = vmatpush.bf16.msra.mxu1 %v378_v9 }
  0x32   :  { %280 = vmatpush.bf16.msra.mxu2 %v386_v23 }
  0x34   :  { %200 = vmatpush.bf16.msra.mxu1 %v377_v10 }
  0x36   :  { %281 = vmatpush.bf16.msra.mxu2 %v385_v24 }
  0x97   :  { %v121_v18 = vpop.f32.mrf.mxu0 }
  0x98   :  { %v122_v19 = vadd.f32 %v401_v17, %v121_v18 }
  0x9a   :  { %v125_v20 = vmax.f32 %v122_v19, 0.0 }
  0x9c   :  { %v143_v21 = vpack.c.bf16 %v125_v20, %v125_v20 }
  0x9e   :  { %201 = vmatmul.bf16.vlgmr.msra.gmra.mxu1 %v143_v21 }
  0x9f   :  { %v123_v22 = vpop.f32.mrf.mxu0 }
 0x11b   :  { %v202_v26 = vpop.f32.mrf.mxu1 }
 0x11c   :  { %v203_v27 = vadd.f32 %v402_v25, %v202_v26 }
 0x11e   :  { %v206_v28 = vmax.f32 %v203_v27, 0.0 }
 0x120   :  { %v224_v29 = vpack.c.bf16 %v206_v28, %v206_v28 }
 0x122   :  { %282 = vmatmul.bf16.vlgmr.msra.gmra.mxu2 %v224_v29 }
 0x123   :  { %v204_v30 = vpop.f32.mrf.mxu1 }
 0x1a5   :  { %v283_v32 = vpop.f32.mrf.mxu2 }
 0x1a6   :  { %v284_v33 = vadd.f32 %v403_v31, %v283_v32 }
 0x1a8   :  { %287 = vst [vmem:[#allocation11] sm:$0xff] %v284_v33 }
 0x1a9   :  { %298 = dma.vmem_to_hbm [thread:$0]  %s294_s4, 128, %s296_s19, [#allocation4]  }
 0x1ad   :  { %v285_v34 = vpop.f32.mrf.mxu2 }
 0x1ae   :  { %554 = dma.done.wait [#allocation4], 128  }
 0x1af   :  { %555 = vsyncadd [#allocation4], 4294967168 }
 0x1b0   :  { %303 = vsyncpa [#allocation3], 1 }
 0x1b1   :  { %304 = vsyncpa [#allocation6], 1 }
 0x1b2   :  { %305 = vsyncpa [#allocation9], 1 }
 0x1b3   :  { %306 = vsyncpa [#allocation4], 1 }

</bundles_post_ra>
